<compile_context>
chip_gen: v5e
topology: v5e:2x2
jax: 0.10.0
libtpu: 0.0.40
codegen_flags: <defaults>
</compile_context>

<pallas_src>
import jax
import jax.numpy as jnp
from jax.experimental import pallas as pl
from jax.experimental.pallas import tpu as pltpu


def _fused_mlp_kernel(*refs):
    # refs = (x_ref, W1t_ref, b1_ref, W2t_ref, b2_ref, ..., o_ref)
    x_ref, o_ref = refs[0], refs[-1]
    wb_refs = refs[1:-1]
    n_layers = len(wb_refs) // 2

    a = x_ref[...]                                    # (B, in) f32, stays in vregs
    for l in range(n_layers):
        w = wb_refs[2 * l][...]                       # (in_l, out_l) pre-transposed
        b = wb_refs[2 * l + 1][...]                   # (1, out_l)
        z = jnp.dot(a, w,
                    preferred_element_type=jnp.float32,
                    precision=jax.lax.Precision.HIGHEST) + b
        a = jax.nn.sigmoid(z)                         # sigmoid on every layer (matches Net)
    o_ref[...] = a.astype(o_ref.dtype)


def _cost_estimate(x, flat_params):
    B = x.shape[0]
    flops = 0
    transcendentals = 0
    bytes_accessed = x.size * 4
    for i in range(0, len(flat_params), 2):
        k, n = flat_params[i].shape
        flops += 2 * B * k * n + B * n                # matmul + bias add
        transcendentals += B * n                      # ~1 exp per sigmoid element
        bytes_accessed += (flat_params[i].size + flat_params[i + 1].size) * 4
    bytes_accessed += B * flat_params[-2].shape[1] * 4
    return pl.CostEstimate(flops=flops, transcendentals=transcendentals,
                           bytes_accessed=bytes_accessed)


def fused_net_forward(flat_params, x):
    """flat_params = [W1t, b1, W2t, b2, ...] from prepare_params(); x: (B, in)."""
    B = x.shape[0]
    out_features = flat_params[-2].shape[1]
    n_in = 1 + len(flat_params)
    # NOTE: batch=8 already matches the f32 sublane size, so the full-array
    # block needs no padding. For B not a multiple of 8 (or large B on v7x),
    # pad/grid the batch dim in the caller.
    return pl.pallas_call(
        _fused_mlp_kernel,
        out_shape=jax.ShapeDtypeStruct((B, out_features), jnp.float32),
        in_specs=[pl.BlockSpec(memory_space=pltpu.MemorySpace.VMEM)] * n_in,
        out_specs=pl.BlockSpec(memory_space=pltpu.MemorySpace.VMEM),
        cost_estimate=_cost_estimate(x, flat_params),
    )(x, *flat_params)


def init_net_params(key, layers):
    """Deterministic init matching nn.Linear shapes: W (out, in), b (out,)."""
    params = []
    for in_size, out_size in zip(layers[:-1], layers[1:]):
        key, kw, kb = jax.random.split(key, 3)
        bound = 1.0 / jnp.sqrt(in_size)
        W = jax.random.uniform(kw, (out_size, in_size), jnp.float32,
                               minval=-bound, maxval=bound)
        b = jax.random.uniform(kb, (out_size,), jnp.float32,
                               minval=-bound, maxval=bound)
        params.append((W, b))
    return params


def prepare_params(params):
    """One-time prep: transpose W -> (in, out); bias -> (1, out). No padding —
    Mosaic handles sub-128 dims internally for these tiny layers."""
    flat = []
    for W, b in params:
        flat.extend([jnp.asarray(W.T, jnp.float32),
                     jnp.asarray(b, jnp.float32).reshape(1, -1)])
    return flat


def net_forward_ref(params, a):
    for (W, b) in params:
        a = jax.nn.sigmoid(
            jnp.dot(a, W.T, precision=jax.lax.Precision.HIGHEST) + b)
    return a


if __name__ == "__main__":
    key = jax.random.PRNGKey(0)
    layers = [32, 64, 16]                   # Layers argument of Net
    batch = 8

    kx, kp = jax.random.split(key)
    x = jax.random.normal(kx, (batch, layers[0]), jnp.float32)
    params = init_net_params(kp, layers)
    flat_params = prepare_params(params)    # transpose ONCE, not per forward

    fwd = jax.jit(fused_net_forward)
    out = jax.block_until_ready(fwd(flat_params, x))

    ref = net_forward_ref(params, x)
    assert out.shape == (batch, layers[-1])
    assert jnp.allclose(out, ref, atol=1e-5, rtol=1e-5)

    print("KERNEL_OK")
</pallas_src>

<mosaic_0001>
module attributes {stable_mosaic.version = 11 : i64} {
  func.func @_fused_mlp_kernel(%arg0: memref<8x32xf32, #tpu.memory_space<vmem>>, %arg1: memref<32x64xf32, #tpu.memory_space<vmem>>, %arg2: memref<1x64xf32, #tpu.memory_space<vmem>>, %arg3: memref<64x16xf32, #tpu.memory_space<vmem>>, %arg4: memref<1x16xf32, #tpu.memory_space<vmem>>, %arg5: memref<8x16xf32, #tpu.memory_space<vmem>>) attributes {dimension_semantics = [], scalar_prefetch = 0 : i64, scratch_operands = 0 : i64, tpu.core_type = #tpu.core_type<tc>} {
    %c0 = arith.constant 0 : index
    %c0_0 = arith.constant 0 : index
    %0 = vector.load %arg0[%c0, %c0_0] : memref<8x32xf32, #tpu.memory_space<vmem>>, vector<8x32xf32>
    %c0_1 = arith.constant 0 : index
    %c0_2 = arith.constant 0 : index
    %1 = vector.load %arg1[%c0_1, %c0_2] : memref<32x64xf32, #tpu.memory_space<vmem>>, vector<32x64xf32>
    %c0_3 = arith.constant 0 : index
    %c0_4 = arith.constant 0 : index
    %2 = vector.load %arg2[%c0_3, %c0_4] : memref<1x64xf32, #tpu.memory_space<vmem>>, vector<1x64xf32>
    %cst = arith.constant dense<0.000000e+00> : vector<8x64xf32>
    %3 = tpu.matmul %0, %1, %cst {dimension_numbers = #tpu.dot_dimension_numbers<[1], [0], [0], [1], [0, 0, 1, 1], [], []>, precision = #tpu.contract_precision<fp32>} : vector<8x32xf32>, vector<32x64xf32>, vector<8x64xf32> -> vector<8x64xf32>
    %4 = vector.broadcast %2 : vector<1x64xf32> to vector<8x64xf32>
    %5 = arith.addf %3, %4 : vector<8x64xf32>
    %6 = arith.negf %5 : vector<8x64xf32>
    %7 = math.exp %6 : vector<8x64xf32>
    %cst_5 = arith.constant 1.000000e+00 : f32
    %8 = vector.broadcast %cst_5 : f32 to vector<8x64xf32>
    %9 = arith.addf %8, %7 : vector<8x64xf32>
    %10 = arith.divf %8, %9 : vector<8x64xf32>
    %c0_6 = arith.constant 0 : index
    %c0_7 = arith.constant 0 : index
    %11 = vector.load %arg3[%c0_6, %c0_7] : memref<64x16xf32, #tpu.memory_space<vmem>>, vector<64x16xf32>
    %c0_8 = arith.constant 0 : index
    %c0_9 = arith.constant 0 : index
    %12 = vector.load %arg4[%c0_8, %c0_9] : memref<1x16xf32, #tpu.memory_space<vmem>>, vector<1x16xf32>
    %cst_10 = arith.constant dense<0.000000e+00> : vector<8x16xf32>
    %13 = tpu.matmul %10, %11, %cst_10 {dimension_numbers = #tpu.dot_dimension_numbers<[1], [0], [0], [1], [0, 0, 1, 1], [], []>, precision = #tpu.contract_precision<fp32>} : vector<8x64xf32>, vector<64x16xf32>, vector<8x16xf32> -> vector<8x16xf32>
    %14 = vector.broadcast %12 : vector<1x16xf32> to vector<8x16xf32>
    %15 = arith.addf %13, %14 : vector<8x16xf32>
    %16 = arith.negf %15 : vector<8x16xf32>
    %17 = math.exp %16 : vector<8x16xf32>
    %cst_11 = arith.constant 1.000000e+00 : f32
    %18 = vector.broadcast %cst_11 : f32 to vector<8x16xf32>
    %19 = arith.addf %18, %17 : vector<8x16xf32>
    %20 = arith.divf %18, %19 : vector<8x16xf32>
    %c0_12 = arith.constant 0 : index
    %c0_13 = arith.constant 0 : index
    %21 = vector.load %arg5[%c0_12, %c0_13] : memref<8x16xf32, #tpu.memory_space<vmem>>, vector<8x16xf32>
    tpu.vector_store %arg5[%c0_12, %c0_13], %20 {strides = array<i32>} : memref<8x16xf32, #tpu.memory_space<vmem>>, vector<8x16xf32>,
    return
  }
}

</mosaic_0001>

<bundles_post_ra>
// kernel: fused_net_forward.1
= control target key start
LH: loop header
LB: loop body
LE: loop exit
PB: predicated region body
PF: predicated region fallthrough
CT: control target
= control target key end

     0   :  { %vm30_vm0 = vcmask 261120   ;;  %s710_s0 = inlined_call_operand.vmem [shape: f32[8,32], index: 0, kind: input, shape index: {}]   ;;  %s711_s1 = inlined_call_operand.vmem [shape: f32[32,64], index: 1, kind: input, shape index: {}]   ;;  %s712_s2 = inlined_call_operand.vmem [shape: f32[1,64], index: 2, kind: input, shape index: {}]   ;;  %s713_s3 = inlined_call_operand.vmem [shape: f32[64,16], index: 3, kind: input, shape index: {}]   ;;  %s714_s4 = inlined_call_operand.vmem [shape: f32[1,16], index: 4, kind: input, shape index: {}]   ;;  %s715_s5 = inlined_call_operand.hbm [shape: f32[8,16], index: 5, kind: output, shape index: {}]  }
   0x1   :  { %v25_v0 = vld [vmem:[%s711_s1 + $0x18] sm:$0xff]  ;;  %v24_v1 = vld [vmem:[%s711_s1 + $0x10] sm:$0xff]  ;;  %v23_v2 = vld [vmem:[%s711_s1 + $0x8] sm:$0xff] }
   0x2   :  { %v46_v3 = vand.u32 4294901760, %v25_v0  ;;  %v48_v4 = vand.u32 4294901760, %v24_v1  ;;  %v50_v5 = vand.u32 4294901760, %v23_v2  ;;  %v22_v6 = vld [vmem:[%s711_s1] sm:$0xff] }
   0x3   :  { %v21_v7 = vld [vmem:[%s710_s0] sm:$0xff]  ;;  %v52_v8 = vand.u32 4294901760, %v22_v6 }
   0x4   :  { %v32_v9 = vsel %vm30_vm0, %v21_v7, 0  ;;  %v76_v10 = vsub.f32 %v25_v0, %v46_v3  ;;  %47 = vmatpush.msra.mxu0 %v46_v3  ;;  %v82_v11 = vsub.f32 %v24_v1, %v48_v4  ;;  %147 = vmatpush.msra.mxu3 %v46_v3  ;;  %v88_v12 = vsub.f32 %v23_v2, %v50_v5 }
   0x5   :  { %v54_v13 = vand.u32 4294901760, %v32_v9 }
   0x6   :  { %10 = vsyncpa [#allocation3], 0  ;;  %v94_v14 = vsub.f32 %v22_v6, %v52_v8  ;;  %118 = vmatpush.msra.mxu2 %v76_v10  ;;  %49 = vmatpush.msra.mxu0 %v48_v4  ;;  %v77_v15 = vand.u32 4294901760, %v76_v10  ;;  %v83_v16 = vand.u32 4294901760, %v82_v11  ;;  %v89_v18 = vand.u32 4294901760, %v88_v12  ;;  %v245_v31 = vld [vmem:[%s713_s3 + $0x38] sm:$0xff] }
   0x7   :  { %v55_v17 = vsub.f32 %v32_v9, %v54_v13  ;;  %149 = vmatpush.msra.mxu3 %v48_v4  ;;  %v616_v32 = vand.u32 4294901760, %v245_v31  ;;  %v244_v33 = vld [vmem:[%s713_s3 + $0x30] sm:$0xff]  ;;  %v243_v36 = vld [vmem:[%s713_s3 + $0x28] sm:$0xff]  ;;  %v242_v40 = vld [vmem:[%s713_s3 + $0x20] sm:$0xff]  ;;  %vm250_vm4 = vcmask 523264   ;;  %s519_s22 = sshll.u32 %s715_s5, 4  ;;  %s520_s22 = int_to_ptr.hbm [resolvable:$true] %s519_s22 }
   0x8   :  { %v95_v19 = vand.u32 4294901760, %v94_v14  ;;  %121 = vmatpush.msra.mxu2 %v82_v11  ;;  %v78_v20 = vsub.f32 %v76_v10, %v77_v15  ;;  %51 = vmatpush.msra.mxu0 %v50_v5  ;;  %v84_v21 = vsub.f32 %v82_v11, %v83_v16  ;;  %v90_v22 = vsub.f32 %v88_v12, %v89_v18  ;;  %v241_v45 = vld [vmem:[%s713_s3 + $0x18] sm:$0xff]  ;;  %v240_v51 = vld [vmem:[%s713_s3 + $0x10] sm:$0xff]  ;;  %v239_v57 = vld [vmem:[%s713_s3 + $0x8] sm:$0xff] }
   0x9   :  { %v56_v23 = vand.u32 4294901760, %v55_v17  ;;  %151 = vmatpush.msra.mxu3 %v50_v5  ;;  %v622_v34 = vsub.f32 %v245_v31, %v616_v32  ;;  %v624_v35 = vand.u32 4294901760, %v244_v33  ;;  %v635_v39 = vand.u32 4294901760, %v243_v36  ;;  %v238_v63 = vld [vmem:[%s713_s3] sm:$0xff] }
   0xa   :  { %v79_v24 = vand.u32 4294901760, %v78_v20  ;;  %124 = vmatpush.msra.mxu2 %v88_v12  ;;  %v85_v25 = vand.u32 4294901760, %v84_v21  ;;  %53 = vmatpush.msra.mxu0 %v52_v8  ;;  %v96_v27 = vsub.f32 %v94_v14, %v95_v19  ;;  %v91_v28 = vand.u32 4294901760, %v90_v22 }
   0xb   :  { %v57_v26 = vsub.f32 %v55_v17, %v56_v23  ;;  %153 = vmatpush.msra.mxu3 %v52_v8  ;;  %v297_v37 = vand.u32 4294901760, %v622_v34  ;;  %v633_v38 = vsub.f32 %v244_v33, %v624_v35  ;;  %v648_v43 = vsub.f32 %v243_v36, %v635_v39 }
   0xc   :  { %176 = vmatpush.msrb.mxu0 %v77_v15  ;;  %80 = vmatpush.msra.mxu1 %v79_v24  ;;  %v97_v30 = vand.u32 4294901760, %v96_v27  ;;  %v650_v44 = vand.u32 4294901760, %v242_v40  ;;  %v667_v50 = vand.u32 4294901760, %v241_v45  ;;  %v675_v55 = vand.u32 4294901760, %v240_v51 }
   0xd   :  { %127 = vmatpush.msra.mxu2 %v94_v14  ;;  %v58_v29 = vand.u32 4294901760, %v57_v26  ;;  %157 = vmatmul.f32.vlgmr.msra.gmra.mxu3 %v56_v23  ;;  %v298_v41 = vsub.f32 %v622_v34, %v297_v37  ;;  %v303_v42 = vand.u32 4294901760, %v633_v38  ;;  %v309_v48 = vand.u32 4294901760, %v648_v43 }
   0xe   :  { %130 = vmatmul.f32.vlgmr.msra.gmra.mxu2 %v55_v17  ;;  %86 = vmatpush.msra.mxu1 %v85_v25  ;;  %v663_v49 = vsub.f32 %v242_v40, %v650_v44  ;;  %v320_v56 = vsub.f32 %v241_v45, %v667_v50  ;;  %v326_v60 = vsub.f32 %v240_v51, %v675_v55  ;;  %v274_v61 = vand.u32 4294901760, %v239_v57 }
   0xf   :  { %59 = vmatmul.f32.vlgmr.msra.gmra.mxu0 %v58_v29  ;;  %263 = vmatpush.msrb.mxu2 %v616_v32  ;;  %v299_v46 = vand.u32 4294901760, %v298_v41  ;;  %v304_v47 = vsub.f32 %v633_v38, %v303_v42  ;;  %v310_v53 = vsub.f32 %v648_v43, %v309_v48  ;;  %vm510_vm9 = vcmask 130048  }
  0x10   :  { %180 = vmatpush.msrb.mxu0 %v83_v16  ;;  %92 = vmatpush.msra.mxu1 %v91_v28  ;;  %v315_v54 = vand.u32 4294901760, %v663_v49  ;;  %v321_v62 = vand.u32 4294901760, %v320_v56  ;;  %v327_v1 = vand.u32 4294901760, %v326_v60  ;;  %v332_v2 = vsub.f32 %v239_v57, %v274_v61 }
  0x11   :  { %265 = vmatpush.msrb.mxu2 %v624_v35  ;;  %300 = vmatpush.msrb.mxu3 %v299_v46  ;;  %v305_v52 = vand.u32 4294901760, %v304_v47  ;;  %v311_v58 = vand.u32 4294901760, %v310_v53  ;;  %v532_v47 = vld [vmem:[%s714_s4] ss:$0 sm:$0xff]  ;;  %s567_s4 = smov [#allocation2]  }
  0x12   :  { %184 = vmatpush.msrb.mxu0 %v89_v18  ;;  %98 = vmatpush.msra.mxu1 %v97_v30  ;;  %v316_v59 = vsub.f32 %v663_v49, %v315_v54  ;;  %v328_v6 = vsub.f32 %v326_v60, %v327_v1  ;;  %v333_v7 = vand.u32 4294901760, %v332_v2  ;;  %s517_s19 = sshll.u32 %s567_s4, 4  ;;  %s518_s19 = int_to_ptr.vmem [resolvable:$true] %s517_s19 }
  0x13   :  { %100 = vmatmul.f32.vlgmr.msra.gmra.mxu1 %v54_v13  ;;  %267 = vmatpush.msrb.mxu2 %v635_v39 }
  0x14   :  { %188 = vmatpush.msrb.mxu0 %v95_v19  ;;  %207 = vmatpush.msrb.mxu1 %v46_v3  ;;  %v317_v0 = vand.u32 4294901760, %v316_v59  ;;  %v276_v3 = vand.u32 4294901760, %v238_v63  ;;  %v329_v11 = vand.u32 4294901760, %v328_v6  ;;  %v334_v12 = vsub.f32 %v332_v2, %v333_v7 }
  0x15   :  { %269 = vmatpush.msrb.mxu2 %v650_v44  ;;  %306 = vmatpush.msrb.mxu3 %v305_v52 }
  0x16   :  { %209 = vmatpush.msrb.mxu1 %v48_v4  ;;  %358 = vmatpush.msra.mxu0 %v622_v34  ;;  %v531_v4 = vld [vmem:[%s712_s2] ss:$0 sm:$0xff]  ;;  %v335_v15 = vand.u32 4294901760, %v334_v12 }
  0x17   :  { %190 = vmatmul.f32.vlgmr.msrb.gmra.mxu0 %v54_v13  ;;  %271 = vmatpush.msrb.mxu2 %v667_v50 }
  0x18   :  { %211 = vmatpush.msrb.mxu1 %v50_v5  ;;  %361 = vmatpush.msra.mxu0 %v633_v38  ;;  %v322_v5 = vsub.f32 %v320_v56, %v321_v62 }
  0x19   :  { %273 = vmatpush.msrb.mxu2 %v675_v55  ;;  %312 = vmatpush.msrb.mxu3 %v311_v58 }
  0x1a   :  { %213 = vmatpush.msrb.mxu1 %v52_v8  ;;  %364 = vmatpush.msra.mxu0 %v648_v43  ;;  %v338_v8 = vsub.f32 %v238_v63, %v276_v3  ;;  %v323_v10 = vand.u32 4294901760, %v322_v5 }
  0x1b   :  { %215 = vmatmul.f32.vlgmr.msrb.gmra.mxu1 %v54_v13  ;;  %275 = vmatpush.msrb.mxu2 %v274_v61 }
  0x1c   :  { %395 = vmatpush.msra.mxu1 %v616_v32  ;;  %367 = vmatpush.msra.mxu0 %v663_v49  ;;  %v339_v13 = vand.u32 4294901760, %v338_v8 }
  0x1d   :  { %318 = vmatpush.msrb.mxu3 %v317_v0  ;;  %277 = vmatpush.msrb.mxu2 %v276_v3 }
  0x1e   :  { %397 = vmatpush.msra.mxu1 %v624_v35  ;;  %370 = vmatpush.msra.mxu0 %v320_v56  ;;  %v340_v16 = vsub.f32 %v338_v8, %v339_v13 }
  0x1f   :  { %428 = vmatpush.msra.mxu2 %v297_v37  ;;  %324 = vmatpush.msrb.mxu3 %v323_v10 }
  0x20   :  { %399 = vmatpush.msra.mxu1 %v635_v39  ;;  %373 = vmatpush.msra.mxu0 %v326_v60  ;;  %v341_v19 = vand.u32 4294901760, %v340_v16 }
  0x21   :  { %432 = vmatpush.msra.mxu2 %v303_v42  ;;  %330 = vmatpush.msrb.mxu3 %v329_v11 }
  0x22   :  { %401 = vmatpush.msra.mxu1 %v650_v44  ;;  %376 = vmatpush.msra.mxu0 %v332_v2 }
  0x23   :  { %436 = vmatpush.msra.mxu2 %v309_v48  ;;  %336 = vmatpush.msrb.mxu3 %v335_v15 }
  0x24   :  { %403 = vmatpush.msra.mxu1 %v667_v50  ;;  %379 = vmatpush.msra.mxu0 %v338_v8 }
  0x25   :  { %440 = vmatpush.msra.mxu2 %v315_v54  ;;  %342 = vmatpush.msrb.mxu3 %v341_v19 }
  0x26   :  { %405 = vmatpush.msra.mxu1 %v675_v55 }
  0x27   :  { %471 = vmatpush.msra.mxu3 %v616_v32  ;;  %444 = vmatpush.msra.mxu2 %v321_v62 }
  0x28   :  { %407 = vmatpush.msra.mxu1 %v274_v61 }
  0x29   :  { %473 = vmatpush.msra.mxu3 %v624_v35  ;;  %448 = vmatpush.msra.mxu2 %v327_v1 }
  0x2a   :  { %409 = vmatpush.msra.mxu1 %v276_v3 }
  0x2b   :  { %475 = vmatpush.msra.mxu3 %v635_v39  ;;  %452 = vmatpush.msra.mxu2 %v333_v7 }
  0x2d   :  { %477 = vmatpush.msra.mxu3 %v650_v44  ;;  %456 = vmatpush.msra.mxu2 %v339_v13 }
  0x2f   :  { %479 = vmatpush.msra.mxu3 %v667_v50 }
  0x31   :  { %481 = vmatpush.msra.mxu3 %v675_v55 }
  0x33   :  { %483 = vmatpush.msra.mxu3 %v274_v61 }
  0x35   :  { %485 = vmatpush.msra.mxu3 %v276_v3 }
  0x8c   :  { %v60_v9 = vpop.f32.mrf.mxu0 }
  0x8d   :  { %v61_v14 = vadd.f32 %v531_v4, %v60_v9 }
  0x90   :  { %v101_v17 = vpop.f32.mrf.mxu1  ;;  %v158_v21 = vpop.f32.mrf.mxu3 }
  0x91   :  { %v131_v18 = vpop.f32.mrf.mxu2  ;;  %v102_v20 = vadd.f32 %v101_v17, %v61_v14 }
  0x93   :  { %v132_v22 = vadd.f32 %v131_v18, %v102_v20 }
  0x94   :  { %v191_v23 = vpop.f32.mrf.mxu0 }
  0x95   :  { %v159_v24 = vadd.f32 %v158_v21, %v132_v22 }
  0x97   :  { %v192_v25 = vadd.f32 %v191_v23, %v159_v24 }
  0x98   :  { %v216_v26 = vpop.f32.mrf.mxu1 }
  0x99   :  { %v217_v27 = vadd.f32 %v216_v26, %v192_v25 }
  0x9b   :  { %v528_v28 = vmul.f32 -1.442695, %v217_v27 }
  0x9d   :  { %533 = vpow2.f32 %v528_v28 }
  0xa3   :  { %v534_v29 = vpop.eup %533 }
  0xa4   :  { %v222_v30 = vadd.f32 1.0, %v534_v29 }
  0xa6   :  { %535 = vrcp.f32 %v222_v30  ;;  %v234_v34 = vand.u32 2147483648, %v222_v30  ;;  %v232_v36 = vand.u32 2147483647, %v222_v30  ;;  %vm228_vm2 = vweird.f32 %v222_v30 }
  0xa8   :  { %v235_v38 = vor.u32 1.1754944e-38, %v234_v34  ;;  %vm233_vm5 = vcmp.eq.f32.partialorder %v232_v36, 8.507059e+37 }
  0xac   :  { %v536_v31 = vpop.eup %535 }
  0xad   :  { %v224_v32 = vmul.f32 %v536_v31, %v222_v30  ;;  %vm229_vm1 = vweird.f32 %v536_v31 }
  0xae   :  { %vm230_vm3 = vmor %vm228_vm2, %vm229_vm1 }
  0xaf   :  { %v225_v33 = vsub.f32 1.0, %v224_v32 }
  0xb1   :  { %v226_v35 = vmul.f32 %v536_v31, %v225_v33 }
  0xb3   :  { %v227_v37 = vadd.f32 %v536_v31, %v226_v35 }
  0xb5   :  { %v231_v39 = vsel %vm230_vm3, %v536_v31, %v227_v37 }
  0xb6   :  { %v236_v40 = vsel %vm233_vm5, %v235_v38, %v231_v39 }
  0xb7   :  { %v252_v41 = vsel %vm250_vm4, %v236_v40, 0 }
  0xb8   :  { %v278_v42 = vand.u32 4294901760, %v252_v41 }
  0xba   :  { %344 = vmatmul.f32.vlgmr.msrb.gmra.mxu3 %v278_v42  ;;  %v279_v43 = vsub.f32 %v252_v41, %v278_v42 }
  0xbc   :  { %382 = vmatmul.f32.vlgmr.msra.gmra.mxu0 %v279_v43  ;;  %v280_v44 = vand.u32 4294901760, %v279_v43 }
  0xbe   :  { %413 = vmatmul.f32.vlgmr.msra.gmra.mxu1 %v280_v44  ;;  %v281_v45 = vsub.f32 %v279_v43, %v280_v44 }
  0xc0   :  { %v282_v46 = vand.u32 4294901760, %v281_v45 }
  0xc2   :  { %283 = vmatmul.f32.vlgmr.msrb.gmra.mxu2 %v282_v46  ;;  %487 = vmatmul.f32.vlgmr.msra.gmra.mxu3 %v278_v42 }
  0xca   :  { %458 = vmatmul.f32.vlgmr.msra.gmra.mxu2 %v278_v42 }
 0x139   :  { %v383_v52 = vpop.f32.mrf.mxu0 }
 0x13b   :  { %v414_v54 = vpop.f32.mrf.mxu1 }
 0x13d   :  { %v345_v48 = vpop.f32.mrf.mxu3 }
 0x145   :  { %v284_v49 = vpop.f32.mrf.mxu2  ;;  %v488_v58 = vpop.f32.mrf.mxu3 }
 0x146   :  { %v285_v50 = vadd.f32 %v532_v47, %v284_v49 }
 0x148   :  { %v346_v51 = vadd.f32 %v345_v48, %v285_v50 }
 0x14a   :  { %v384_v53 = vadd.f32 %v383_v52, %v346_v51 }
 0x14c   :  { %v415_v55 = vadd.f32 %v414_v54, %v384_v53 }
 0x14d   :  { %v459_v56 = vpop.f32.mrf.mxu2 }
 0x14e   :  { %v460_v57 = vadd.f32 %v459_v56, %v415_v55 }
 0x150   :  { %v489_v59 = vadd.f32 %v488_v58, %v460_v57 }
 0x152   :  { %v529_v60 = vmul.f32 -1.442695, %v489_v59 }
 0x154   :  { %537 = vpow2.f32 %v529_v60 }
 0x15a   :  { %v538_v61 = vpop.eup %537 }
 0x15b   :  { %v494_v62 = vadd.f32 1.0, %v538_v61 }
 0x15d   :  { %539 = vrcp.f32 %v494_v62  ;;  %v506_v2 = vand.u32 2147483648, %v494_v62  ;;  %v504_v4 = vand.u32 2147483647, %v494_v62  ;;  %vm500_vm7 = vweird.f32 %v494_v62 }
 0x15f   :  { %v507_v6 = vor.u32 1.1754944e-38, %v506_v2  ;;  %vm505_vm10 = vcmp.eq.f32.partialorder %v504_v4, 8.507059e+37 }
 0x163   :  { %v540_v63 = vpop.eup %539 }
 0x164   :  { %v496_v0 = vmul.f32 %v540_v63, %v494_v62  ;;  %vm501_vm6 = vweird.f32 %v540_v63 }
 0x165   :  { %vm502_vm8 = vmor %vm500_vm7, %vm501_vm6 }
 0x166   :  { %v497_v1 = vsub.f32 1.0, %v496_v0 }
 0x168   :  { %v498_v3 = vmul.f32 %v540_v63, %v497_v1 }
 0x16a   :  { %v499_v5 = vadd.f32 %v540_v63, %v498_v3 }
 0x16c   :  { %v503_v7 = vsel %vm502_vm8, %v540_v63, %v499_v5 }
 0x16d   :  { %v508_v8 = vsel %vm505_vm10, %v507_v6, %v503_v7 }
 0x16e   :  { %511 = vst.msk [vmem:[#allocation2] sm:$0xff] %vm510_vm9, %v508_v8 }
 0x16f   :  { %522 = dma.vmem_to_hbm [thread:$0]  %s518_s19, 128, %s520_s22, [#allocation3]  }
 0x170   :  { %565 = dma.done.wait [#allocation3], 128  }
 0x171   :  { %566 = vsyncadd [#allocation3], 4294967168 }
 0x172   :  { %527 = vsyncpa [#allocation3], 1 }

</bundles_post_ra>
